<compile_context>
chip_gen: v5e
topology: v5e:2x2
jax: 0.10.0
libtpu: 0.0.40
codegen_flags: <defaults>
</compile_context>

<pallas_src>
import functools
import math

import jax
import jax.numpy as jnp
from jax.experimental import pallas as pl
from jax.experimental.pallas import tpu as pltpu


def _round_up(x, m):
    return ((x + m - 1) // m) * m


# ---------------------------------------------------------------------------
# Kernel 1: fused Q/K/V projection.   out[tm, 3H] = x[tm, H] @ Wqkv[H, 3H] + b
# ---------------------------------------------------------------------------
def _qkv_proj_kernel(x_ref, w_ref, b_ref, o_ref):
    acc = jnp.dot(x_ref[...], w_ref[...], preferred_element_type=jnp.float32)
    acc = acc + b_ref[...].astype(jnp.float32)          # (1, 3H) broadcasts
    o_ref[...] = acc.astype(o_ref.dtype)


@functools.partial(jax.jit, static_argnames=("tm",))
def qkv_projection(x2d, w_qkv, b_qkv, *, tm=256):
    """x2d: [M, H], w_qkv: [H, 3H], b_qkv: [1, 3H] -> [M, 3H]."""
    M, H = x2d.shape
    threeH = w_qkv.shape[1]

    # tm=256 keeps the padding waste bounded and the double-buffered tiles +
    # resident weight inside every generation's VMEM budget.
    tm = max(8, min(_round_up(tm, 8), _round_up(M, 8)))
    grid_m = pl.cdiv(M, tm)
    if grid_m == 1 and M > 8:
        # Ensure >=2 grid steps so the "parallel" axis can shard across the
        # two TensorCores on v7x.
        tm = _round_up(pl.cdiv(M, 2), 8)
        grid_m = pl.cdiv(M, tm)
    Mp = grid_m * tm
    if Mp != M:
        x2d = jnp.pad(x2d, ((0, Mp - M), (0, 0)))       # pad, never drop rows

    out = pl.pallas_call(
        _qkv_proj_kernel,
        out_shape=jax.ShapeDtypeStruct((Mp, threeH), x2d.dtype),
        grid_spec=pl.GridSpec(
            grid=(grid_m,),
            in_specs=[
                pl.BlockSpec((tm, H), lambda i: (i, 0)),
                pl.BlockSpec((H, threeH), lambda i: (0, 0)),   # weight resident
                pl.BlockSpec((1, threeH), lambda i: (0, 0)),   # bias resident
            ],
            out_specs=pl.BlockSpec((tm, threeH), lambda i: (i, 0)),
        ),
        compiler_params=pltpu.CompilerParams(
            dimension_semantics=("parallel",),
            vmem_limit_bytes=48 * 1024 * 1024),
    )(x2d, w_qkv, b_qkv)
    return out[:M]


# ---------------------------------------------------------------------------
# Kernel 2: fused scaled-dot-product attention, one program per batch.
# Reads Q/K/V as column blocks of the fused qkv buffer; writes the final
# [bs, S, H] layout directly (lane-dense H-wide output stores).
# ---------------------------------------------------------------------------
def _mha_kernel(q_ref, k_ref, v_ref, mask_ref, o_ref, *,
                scale, num_heads, head_dim):
    # q/k/v refs: (1, S, H) column slabs of qkv; mask: (1, 1, S); o: (1, S, H)
    mask = mask_ref[0].astype(jnp.float32)                   # (1, S)
    # Static unroll over heads (nh is small); per-head live set is one (S, S)
    # f32 score tile, so VMEM stays bounded even for S=512 on v7x.
    for h in range(num_heads):
        c0 = h * head_dim
        q = q_ref[0, :, c0:c0 + head_dim] * scale            # fold 1/sqrt(hd)
        k = k_ref[0, :, c0:c0 + head_dim]
        v = v_ref[0, :, c0:c0 + head_dim]
        # scores = (Q*scale) @ K^T + mask   (contraction over hd, no transpose)
        s = jax.lax.dot_general(
            q, k, (((1,), (1,)), ((), ())),
            preferred_element_type=jnp.float32)               # (S, S)
        s = s + mask
        # numerically stable softmax; normalization deferred past the PV matmul
        m = jnp.max(s, axis=-1, keepdims=True)
        p = jnp.exp(s - m)
        denom = jnp.sum(p, axis=-1, keepdims=True)            # (S, 1) f32
        pv = jnp.dot(p.astype(v.dtype), v,
                     preferred_element_type=jnp.float32)       # (S, hd)
        out_h = pv * pl.reciprocal(denom, approx=True)
        o_ref[0, :, c0:c0 + head_dim] = out_h.astype(o_ref.dtype)


@functools.partial(jax.jit, static_argnames=("num_heads",))
def bert_self_attention(hidden_states, attention_mask, w_qkv, b_qkv, *,
                        num_heads):
    """hidden_states: [bs, S, H], attention_mask: [bs, 1, 1, S] -> [bs, S, H]."""
    bs, S, H = hidden_states.shape
    hd = H // num_heads

    # ---- fused QKV projection (single pallas_call) ----
    x2d = hidden_states.reshape(bs * S, H)
    qkv = qkv_projection(x2d, w_qkv, b_qkv)                   # [bs*S, 3H]
    qkv = qkv.reshape(bs, S, 3 * H)                           # free reshape

    mask3d = attention_mask.reshape(bs, 1, S).astype(jnp.float32)
    scale = 1.0 / math.sqrt(hd)
    kernel = functools.partial(_mha_kernel, scale=scale,
                               num_heads=num_heads, head_dim=hd)

    out = pl.pallas_call(
        kernel,
        out_shape=jax.ShapeDtypeStruct((bs, S, H), hidden_states.dtype),
        grid_spec=pl.GridSpec(
            grid=(bs,),
            in_specs=[
                # Column blocks of the fused qkv buffer: Q | K | V.
                pl.BlockSpec((1, S, H), lambda b: (b, 0, 0)),
                pl.BlockSpec((1, S, H), lambda b: (b, 0, 1)),
                pl.BlockSpec((1, S, H), lambda b: (b, 0, 2)),
                pl.BlockSpec((1, 1, S), lambda b: (b, 0, 0)),
            ],
            out_specs=pl.BlockSpec((1, S, H), lambda b: (b, 0, 0)),
        ),
        compiler_params=pltpu.CompilerParams(
            dimension_semantics=("parallel",)),
    )(qkv, qkv, qkv, mask3d)
    return out                                                # already [bs,S,H]


class BertSelfAttentionPallas:
    """JAX/Pallas port of BertSelfAttention.forward."""

    def __init__(self, hidden_size, num_attention_heads,
                 attention_probs_dropout_prob, key):
        assert hidden_size % num_attention_heads == 0
        self.num_attention_heads = num_attention_heads
        self.attention_head_size = hidden_size // num_attention_heads
        self.all_head_size = hidden_size
        # dropout prob kept for parity; never applied in the reference
        # attention() path, so it does not enter the kernels.
        self.attention_probs_dropout_prob = attention_probs_dropout_prob

        kq, kk, kv, kbq, kbk, kbv = jax.random.split(key, 6)
        s = 0.02
        # Stored as [in, out] (torch W.T), so projection is y = x @ W + b.
        self.w_q = jax.random.normal(kq, (hidden_size, hidden_size), jnp.float32) * s
        self.w_k = jax.random.normal(kk, (hidden_size, hidden_size), jnp.float32) * s
        self.w_v = jax.random.normal(kv, (hidden_size, hidden_size), jnp.float32) * s
        self.b_q = jax.random.normal(kbq, (hidden_size,), jnp.float32) * s
        self.b_k = jax.random.normal(kbk, (hidden_size,), jnp.float32) * s
        self.b_v = jax.random.normal(kbv, (hidden_size,), jnp.float32) * s

        # Pre-fused QKV params (perf feedback): concat once at init so the
        # jitted forward never re-materializes a 3*H^2 buffer per call.
        self.w_qkv = jnp.concatenate([self.w_q, self.w_k, self.w_v], axis=1)
        self.b_qkv = jnp.concatenate([self.b_q, self.b_k, self.b_v])[None, :]

    def __call__(self, hidden_states, attention_mask):
        return bert_self_attention(
            hidden_states, attention_mask, self.w_qkv, self.b_qkv,
            num_heads=self.num_attention_heads)


def _reference_forward(x, mask, layer):
    """Pure-JAX replica of the torch forward (high precision)."""
    bs, S, H = x.shape
    nh = layer.num_attention_heads
    hd = layer.attention_head_size

    def proj(w, b):
        p = jnp.einsum("bsh,hk->bsk", x, w, precision="highest") + b
        return p.reshape(bs, S, nh, hd).transpose(0, 2, 1, 3)

    q = proj(layer.w_q, layer.b_q)
    k = proj(layer.w_k, layer.b_k)
    v = proj(layer.w_v, layer.b_v)
    scores = jnp.einsum("bhqd,bhkd->bhqk", q, k,
                        precision="highest") / jnp.sqrt(jnp.float32(hd))
    scores = scores + mask                                    # [bs,1,1,S]
    probs = jax.nn.softmax(scores, axis=-1)
    out = jnp.einsum("bhqk,bhkd->bhqd", probs, v, precision="highest")
    return out.transpose(0, 2, 1, 3).reshape(bs, S, H)


if __name__ == "__main__":
    key = jax.random.PRNGKey(0)
    k_x, k_p = jax.random.split(key)

    bs, seq, hidden, num_heads = 2, 128, 128, 4

    hidden_states = jax.random.normal(k_x, (bs, seq, hidden), jnp.float32)

    # BERT-style additive mask: 0 for valid positions, -10000 for padding.
    lengths = jnp.array([seq, seq - 32])
    pos = jnp.arange(seq)
    attention_mask = jnp.where(pos[None, :] < lengths[:, None], 0.0, -10000.0)
    attention_mask = attention_mask.reshape(bs, 1, 1, seq).astype(jnp.float32)

    layer = BertSelfAttentionPallas(hidden_size=hidden,
                                    num_attention_heads=num_heads,
                                    attention_probs_dropout_prob=0.1,
                                    key=k_p)

    out = layer(hidden_states, attention_mask)
    jax.block_until_ready(out)

    ref = _reference_forward(hidden_states, attention_mask, layer)
    assert out.shape == (bs, seq, hidden)
    max_err = float(jnp.max(jnp.abs(out - ref)))
    assert jnp.allclose(out, ref, atol=2e-3, rtol=2e-3), max_err

    print("KERNEL_OK")
</pallas_src>

<mosaic_0001>
module attributes {stable_mosaic.version = 11 : i64} {
  func.func @_qkv_proj_kernel(%arg0: i32, %arg1: memref<128x128xf32, #tpu.memory_space<vmem>>, %arg2: memref<128x384xf32, #tpu.memory_space<vmem>>, %arg3: memref<1x384xf32, #tpu.memory_space<vmem>>, %arg4: memref<128x384xf32, #tpu.memory_space<vmem>>) attributes {dimension_semantics = [#tpu.dimension_semantics<parallel>], iteration_bounds = array<i64: 2>, scalar_prefetch = 0 : i64, scratch_operands = 0 : i64, tpu.core_type = #tpu.core_type<tc>, window_params = [{transform_indices = @transform_0, window_bounds = array<i64: 128, 128>}, {pipeline_mode = #tpu.pipeline_mode<synchronous>, transform_indices = @transform_1, window_bounds = array<i64: 128, 384>}, {pipeline_mode = #tpu.pipeline_mode<synchronous>, transform_indices = @transform_2, window_bounds = array<i64: 1, 384>}, {transform_indices = @transform_3, window_bounds = array<i64: 128, 384>}]} {
    %c0 = arith.constant 0 : index
    %c0_0 = arith.constant 0 : index
    %0 = vector.load %arg1[%c0, %c0_0] : memref<128x128xf32, #tpu.memory_space<vmem>>, vector<128x128xf32>
    %c0_1 = arith.constant 0 : index
    %c0_2 = arith.constant 0 : index
    %1 = vector.load %arg2[%c0_1, %c0_2] : memref<128x384xf32, #tpu.memory_space<vmem>>, vector<128x384xf32>
    %cst = arith.constant dense<0.000000e+00> : vector<128x384xf32>
    %2 = tpu.matmul %0, %1, %cst {dimension_numbers = #tpu.dot_dimension_numbers<[1], [0], [0], [1], [0, 0, 1, 1], [], []>} : vector<128x128xf32>, vector<128x384xf32>, vector<128x384xf32> -> vector<128x384xf32>
    %c0_3 = arith.constant 0 : index
    %c0_4 = arith.constant 0 : index
    %3 = vector.load %arg3[%c0_3, %c0_4] : memref<1x384xf32, #tpu.memory_space<vmem>>, vector<1x384xf32>
    %4 = vector.broadcast %3 : vector<1x384xf32> to vector<128x384xf32>
    %5 = arith.addf %2, %4 : vector<128x384xf32>
    %c0_5 = arith.constant 0 : index
    %c0_6 = arith.constant 0 : index
    %6 = vector.load %arg4[%c0_5, %c0_6] : memref<128x384xf32, #tpu.memory_space<vmem>>, vector<128x384xf32>
    tpu.vector_store %arg4[%c0_5, %c0_6], %5 {strides = array<i32>} : memref<128x384xf32, #tpu.memory_space<vmem>>, vector<128x384xf32>,
    return
  }
  func.func @transform_0(%arg0: i32) -> (i32, i32) {
    %c0_i32 = arith.constant 0 : i32
    %c0_i32_0 = arith.constant 0 : i32
    return %arg0, %c0_i32 : i32, i32
  }
  func.func @transform_1(%arg0: i32) -> (i32, i32) {
    %c0_i32 = arith.constant 0 : i32
    %c0_i32_0 = arith.constant 0 : i32
    %c0_i32_1 = arith.constant 0 : i32
    return %c0_i32, %c0_i32_0 : i32, i32
  }
  func.func @transform_2(%arg0: i32) -> (i32, i32) {
    %c0_i32 = arith.constant 0 : i32
    %c0_i32_0 = arith.constant 0 : i32
    %c0_i32_1 = arith.constant 0 : i32
    return %c0_i32, %c0_i32_0 : i32, i32
  }
  func.func @transform_3(%arg0: i32) -> (i32, i32) {
    %c0_i32 = arith.constant 0 : i32
    %c0_i32_0 = arith.constant 0 : i32
    return %arg0, %c0_i32 : i32, i32
  }
}

</mosaic_0001>

<bundles_post_ra>
// kernel: qkv_projection.1
= control target key start
LH: loop header
LB: loop body
LE: loop exit
PB: predicated region body
PF: predicated region fallthrough
CT: control target
= control target key end

     0   :  { %8 = vsyncpa [#allocation3], 0  ;;  %s1372_s0 = inlined_call_operand.hbm [shape: f32[256,128], index: 0, kind: input, shape index: {}]   ;;  %s1373_s1 = inlined_call_operand.hbm [shape: f32[128,384], index: 1, kind: input, shape index: {}]   ;;  %s1374_s2 = inlined_call_operand.hbm [shape: f32[1,384], index: 2, kind: input, shape index: {}]   ;;  %s1375_s3 = inlined_call_operand.hbm [shape: f32[256,384], index: 3, kind: output, shape index: {}]  }
   0x1   :  { %10 = vsyncpa [#allocation3 + $0x1], 0 }
   0x2   :  { %11 = vsyncpa [#allocation6], 0 }
   0x3   :  { %12 = vsyncpa [#allocation4], 0 }
   0x4   :  { %14 = vsyncpa [#allocation4 + $0x1], 0  ;;  %s979_s12 = smov 0   ;;  %s981_s13 = smov 0  }
   0x5   :  { %s983_s14 = smov 0   ;;  %s985_s15 = smov 0  }
   0x6 LB: > { %s1000_s16 = sadd.s32 4294967295, %s949_s15   ;;  %s648_s17 = sadd.s32 4294967294, %s949_s15   ;;  %s949_s15 = sphi %s985_s15, %s1385_s15   ;;  %s945_s14 = sphi %s983_s14, %s1384_s14   ;;  %s941_s13 = sphi %s981_s13, %s1383_s13   ;;  %s937_s12 = sphi %s979_s12, %s1382_s12  }
   0x7   : > { %p40_p0 = scmp.ne.s32.totalorder %s941_s13, %s937_s12  ;;  %p41_p1 = scmp.eq.s32.totalorder %s1000_s16, 0 }
   0x8   : > { %p106_p2 = scmp.eq.s32.totalorder %s1000_s16, 1  ;;  %p112_p3 = scmp.eq.s32.totalorder %s648_s17, 1 }
   0x9   : > { %p1009_p4 = por %p41_p1, %p40_p0  ;;  %p649_p5 = scmp.ge.s32.totalorder %s949_s15, 1 }
   0xa   : > { %p1014_p6 = por %p112_p3, %p40_p0  ;;  %p119_p7 = scmp.lt.s32.totalorder %s949_s15, 3 }
   0xb   : > { %s130_s22 = sshll.u32 %s1373_s1, 4  ;;  %s951_s24 = smov [#allocation5]   ;;  %s131_s22 = int_to_ptr.hbm [resolvable:$true] %s130_s22 }
   0xc   : > { %p1022_p8 = pnand %p649_p5, %p119_p7  ;;  %s132_s25 = sshll.u32 %s951_s24, 4  ;;  %s133_s25 = int_to_ptr.vmem [resolvable:$true] %s132_s25 }
   0xd   : > { %s145_s28 = sshll.u32 %s1374_s2, 4  ;;  %s952_s29 = smov 384   ;;  %s146_s28 = int_to_ptr.hbm [resolvable:$true] %s145_s28 }
   0xe   : > { %p728_p9 = pneg %p1022_p8  ;;  %s953_s30 = smov 24  }
   0xf   : > { %s954_s4 = smov [#allocation7]   ;;  %s1035_s6 = sadd.s32 1, %s949_s15  }
  0x10   : > { %p729_p10 = pnand %p728_p9, %p41_p1  ;;  %s147_s5 = sshll.u32 %s954_s4, 4  ;;  %s148_s5 = int_to_ptr.vmem [resolvable:$true] %s147_s5 }
  0x11   : > { %s27_s7 = sadd.s32 1, %s945_s14  ;;  %s24_s8 = ssub.s32 %s949_s15, %s1035_s6 }
  0x12   : > { %731 = dma.hbm_to_vmem [thread:$0]  (!%p729_p10), %s131_s22, 6144, %s133_s25, [#allocation6], %s952_s29, %s952_s29, %s953_s30  }
  0x13   : > { %734 = dma.hbm_to_vmem [thread:$0]  (!%p729_p10), %s146_s28, 48, %s148_s5, [#allocation6]  }
  0x14   : > { %p34_p12 = scmp.ne.s32.totalorder %s945_s14, %s941_s13  ;;  %p25_p13 = scmp.eq.s32.totalorder %s24_s8, 0 }
  0x15   : > { %p35_p0 = scmp.eq.s32.totalorder %s949_s15, 0  ;;  %p745_p5 = scmp.lt.s32.totalorder %s949_s15, 2 }
  0x16   : > { %p1045_p3 = por %p106_p2, %p34_p12  ;;  %s158_s11 = sand.u32 1, %s945_s14  }
  0x17   : > { %s1051_s10 = scalar_select %p25_p13, %s945_s14, %s27_s7  }
  0x18   : > { %p36_p7 = por %p35_p0, %p34_p12  ;;  %s653_s17 = sshll.u32 %s158_s11, 7 }
  0x19   : > { %s665_s20 = sshll.u32 %s949_s15, 7  ;;  %s162_s25 = scalar_lea.vmem [#allocation2], %s653_s17 }
  0x1a   : > { %s167_s24 = scalar_lea.hbm %s1372_s0, %s665_s20  ;;  %s170_s26 = sshll.u32 %s162_s25, 4  ;;  %s171_s26 = int_to_ptr.vmem [resolvable:$true] %s170_s26 }
  0x1b   : > { %s168_s27 = sshll.u32 %s167_s24, 4  ;;  %p1058_p2 = pnand %p745_p5, %p36_p7  ;;  %s169_s27 = int_to_ptr.hbm [resolvable:$true] %s168_s27 }
  0x1c   : > { %s159_s29 = scalar_lea.sflag [#allocation3], %s158_s11  ;;  %s849_s30 = sshra.s32 %s169_s27, 4  ;;  %s850_s30 = int_to_ptr.hbm [resolvable:$true] %s849_s30 }
  0x1d   : > { %s851_s4 = scalar_lea.hbm %s850_s30, 128  ;;  %p853_p10 = pneg %p1058_p2 }
  0x1e   : > { %p852_p9 = scmp.ne.s32.totalorder %s850_s30, %s851_s4  ;;  %s856_s8 = scalar_lea.hbm %s1372_s0, 256 }
  0x1f   : > { %p857_p0 = scmp.lt.s32.totalorder %s850_s30, %s1372_s0  ;;  %p858_p5 = scmp.lt.s32.totalorder %s856_s8, %s851_s4 }
  0x20   : > { %p854_p12 = pnand %p853_p10, %p852_p9 }
  0x21   : > { %p859_p7 = por %p858_p5, %p857_p0 }
  0x22   : > { %p855_p13 = pneg %p854_p12 }
  0x24   : > { %p860_p11 = pnand %p859_p7, %p855_p13 }
  0x26   : > { %863 = shalt.err (!%p860_p11)
}
  0x27   : > { %s955_s11 = smov 128   ;;  %s956_s21 = smov 8  }
  0x28   : > { %738 = dma.hbm_to_vmem [thread:$0]  (!%p1058_p2), %s169_s27, 2048, %s171_s26, %s159_s29, %s955_s11, %s955_s11, %s956_s21  }
  0x29   : > { %182 = sbr.rel (%p1022_p8) target bundleno = 308 (0x134), region = 32  ;;  %s1075_s22 = sand.u32 (!%p1022_p8), 1, %s941_s13  }
  0x2a   : > { %s657_s24 = sshll.u32 (!%p1022_p8), %s1075_s22, 7  ;;  %s185_s25 = scalar_lea.sflag (!%p1022_p8), [#allocation3], %s1075_s22 }
  0x2b   : > { %s1079_s30 = scalar_lea.vmem (!%p1022_p8), [#allocation2], %s657_s24 }
  0x2e   : > { %924 = dma.done.wait (%p1009_p4), %s185_s25, 2048  }
  0x2f   : > { %926 = vsyncadd (%p1009_p4), %s185_s25, 4294965248 }
  0x30   : > { %928 = dma.done.wait (%p41_p1), [#allocation6], 6192  }
  0x31   : > { %930 = vsyncadd (%p41_p1), [#allocation6], 4294961104  ;;  %v285_v0 = vld [vmem:[#allocation5 + $0x168] sm:$0xff]  ;;  %v1089_v1 = vld [vmem:[#allocation5 + $0x178] sm:$0xff]  ;;  %s714_s18 = smul.u32 384, %s1075_s22  ;;  %s540_s5 = scalar_lea.sflag [#allocation4], %s1075_s22 }
  0x32   : > { %v282_v2 = vld [vmem:[#allocation5 + $0x150] sm:$0xff]  ;;  %666 = vmatpush.msra.mxu3 %v285_v0  ;;  %426 = vmatpush.msra.mxu2 %v1089_v1  ;;  %v1092_v3 = vld [vmem:[#allocation5 + $0x160] sm:$0xff]  ;;  %v279_v4 = vld [vmem:[#allocation5 + $0x138] sm:$0xff]  ;;  %s715_s26 = smul.u32 384, %s1000_s16  ;;  %s899_s11 = scalar_lea.hbm %s1375_s3, 768 }
  0x33   : > { %v1094_v5 = vld [vmem:[#allocation5 + $0x148] sm:$0xff]  ;;  %296 = vmatpush.msra.mxu0 %v285_v0  ;;  %v1096_v6 = vld [vmem:[#allocation5 + $0x170] sm:$0xff]  ;;  %v1099_v7 = vld [vmem:[#allocation5 + $0x158] sm:$0xff]  ;;  %s1242_s23 = scalar_lea.vmem [#allocation8], %s714_s18 }
  0x34   : > { %667 = vmatpush.msra.mxu3 %v282_v2  ;;  %427 = vmatpush.msra.mxu2 %v1092_v3  ;;  %v276_v8 = vld [vmem:[#allocation5 + $0x120] sm:$0xff]  ;;  %v1102_v9 = vld [vmem:[#allocation5 + $0x130] sm:$0xff]  ;;  %v273_v11 = vld [vmem:[#allocation5 + $0x108] sm:$0xff]  ;;  %s552_s29 = scalar_lea.hbm %s1375_s3, %s715_s26  ;;  %s553_s16 = sshll.u32 %s1242_s23, 4  ;;  %s554_s16 = int_to_ptr.vmem [resolvable:$true] %s553_s16 }
  0x35   : > { %361 = vmatpush.msra.mxu1 %v1096_v6  ;;  %297 = vmatpush.msra.mxu0 %v282_v2  ;;  %v1105_v10 = vld [vmem:[#allocation5 + $0x140] sm:$0xff]  ;;  %v1108_v12 = vld [vmem:[#allocation5 + $0x118] sm:$0xff]  ;;  %v1111_v13 = vld [vmem:[#allocation5 + $0x128] sm:$0xff]  ;;  %s555_s4 = sshll.u32 %s552_s29, 4  ;;  %s556_s4 = int_to_ptr.hbm [resolvable:$true] %s555_s4 }
  0x36   : > { %668 = vmatpush.msra.mxu3 %v279_v4  ;;  %428 = vmatpush.msra.mxu2 %v1094_v5  ;;  %v270_v14 = vld [vmem:[#allocation5 + $0xf0] sm:$0xff]  ;;  %v1114_v15 = vld [vmem:[#allocation5 + $0x100] sm:$0xff]  ;;  %v267_v17 = vld [vmem:[#allocation5 + $0xd8] sm:$0xff]  ;;  %s893_s7 = sshra.s32 %s556_s4, 4  ;;  %s894_s7 = int_to_ptr.hbm [resolvable:$true] %s893_s7 }
  0x37   : > { %362 = vmatpush.msra.mxu1 %v1099_v7  ;;  %298 = vmatpush.msra.mxu0 %v279_v4  ;;  %v1117_v16 = vld [vmem:[#allocation5 + $0x110] sm:$0xff]  ;;  %v1120_v18 = vld [vmem:[#allocation5 + $0xe8] sm:$0xff]  ;;  %v1123_v19 = vld [vmem:[#allocation5 + $0xf8] sm:$0xff]  ;;  %s895_s8 = scalar_lea.hbm %s894_s7, 384  ;;  %p900_p11 = scmp.lt.s32.totalorder %s894_s7, %s1375_s3 }
  0x38   : > { %669 = vmatpush.msra.mxu3 %v276_v8  ;;  %429 = vmatpush.msra.mxu2 %v1102_v9  ;;  %v264_v20 = vld [vmem:[#allocation5 + $0xc0] sm:$0xff]  ;;  %v1126_v21 = vld [vmem:[#allocation5 + $0xd0] sm:$0xff]  ;;  %v261_v23 = vld [vmem:[#allocation5 + $0xa8] sm:$0xff]  ;;  %p896_p1 = scmp.ne.s32.totalorder %s894_s7, %s895_s8  ;;  %p901_p2 = scmp.lt.s32.totalorder %s899_s11, %s895_s8 }
  0x39   : > { %363 = vmatpush.msra.mxu1 %v1105_v10  ;;  %299 = vmatpush.msra.mxu0 %v276_v8  ;;  %v1129_v22 = vld [vmem:[#allocation5 + $0xe0] sm:$0xff]  ;;  %v1132_v24 = vld [vmem:[#allocation5 + $0xb8] sm:$0xff]  ;;  %v1135_v25 = vld [vmem:[#allocation5 + $0xc8] sm:$0xff] }
  0x3a   : > { %670 = vmatpush.msra.mxu3 %v273_v11  ;;  %430 = vmatpush.msra.mxu2 %v1108_v12  ;;  %v258_v26 = vld [vmem:[#allocation5 + $0x90] sm:$0xff]  ;;  %v1138_v27 = vld [vmem:[#allocation5 + $0xa0] sm:$0xff]  ;;  %v255_v29 = vld [vmem:[#allocation5 + $0x78] sm:$0xff]  ;;  %p897_p4 = pnand %p896_p1, %p1045_p3  ;;  %p902_p9 = por %p901_p2, %p900_p11 }
  0x3b   : > { %364 = vmatpush.msra.mxu1 %v1111_v13  ;;  %300 = vmatpush.msra.mxu0 %v273_v11  ;;  %v1141_v28 = vld [vmem:[#allocation5 + $0xb0] sm:$0xff]  ;;  %v1144_v30 = vld [vmem:[#allocation5 + $0x88] sm:$0xff]  ;;  %v1147_v31 = vld [vmem:[#allocation5 + $0x98] sm:$0xff] }
  0x3c   : > { %671 = vmatpush.msra.mxu3 %v270_v14  ;;  %431 = vmatpush.msra.mxu2 %v1114_v15  ;;  %v252_v32 = vld [vmem:[#allocation5 + $0x60] sm:$0xff]  ;;  %v1150_v33 = vld [vmem:[#allocation5 + $0x70] sm:$0xff]  ;;  %v249_v35 = vld [vmem:[#allocation5 + $0x48] sm:$0xff]  ;;  %p898_p8 = pneg %p897_p4 }
  0x3d   : > { %365 = vmatpush.msra.mxu1 %v1117_v16  ;;  %301 = vmatpush.msra.mxu0 %v270_v14  ;;  %v1153_v34 = vld [vmem:[#allocation5 + $0x80] sm:$0xff]  ;;  %v1156_v36 = vld [vmem:[#allocation5 + $0x58] sm:$0xff]  ;;  %v253_v37 = vld [vmem:[#allocation5 + $0x68] sm:$0xff] }
  0x3e   : > { %672 = vmatpush.msra.mxu3 %v267_v17  ;;  %432 = vmatpush.msra.mxu2 %v1120_v18  ;;  %v246_v38 = vld [vmem:[#allocation5 + $0x30] sm:$0xff]  ;;  %v1160_v39 = vld [vmem:[#allocation5 + $0x40] sm:$0xff]  ;;  %v243_v41 = vld [vmem:[#allocation5 + $0x18] sm:$0xff]  ;;  %p903_p10 = pnand %p902_p9, %p898_p8 }
  0x3f   : > { %366 = vmatpush.msra.mxu1 %v1123_v19  ;;  %302 = vmatpush.msra.mxu0 %v267_v17  ;;  %v250_v40 = vld [vmem:[#allocation5 + $0x50] sm:$0xff]  ;;  %v1163_v42 = vld [vmem:[#allocation5 + $0x28] sm:$0xff]  ;;  %v247_v43 = vld [vmem:[#allocation5 + $0x38] sm:$0xff] }
  0x40   : > { %673 = vmatpush.msra.mxu3 %v264_v20  ;;  %433 = vmatpush.msra.mxu2 %v1126_v21  ;;  %v240_v44 = vld [vmem:[#allocation5] sm:$0xff]  ;;  %v1166_v45 = vld [vmem:[#allocation5 + $0x10] sm:$0xff]  ;;  %v241_v49 = vld [vmem:[#allocation5 + $0x8] sm:$0xff] }
  0x41   : > { %367 = vmatpush.msra.mxu1 %v1129_v22  ;;  %303 = vmatpush.msra.mxu0 %v264_v20  ;;  %v1170_v46 = vld [vmem:[%s1079_s30 + $0x60] sm:$0xff]  ;;  %v1179_v50 = vld [vmem:[%s1079_s30 + $0x68] sm:$0xff]  ;;  %v1188_v52 = vld [vmem:[%s1079_s30 + $0x70] sm:$0xff] }
  0x42   : > { %674 = vmatpush.msra.mxu3 %v261_v23  ;;  %434 = vmatpush.msra.mxu2 %v1132_v24  ;;  %v224_v47 = vld [vmem:[%s1079_s30] sm:$0xff]  ;;  %v225_v51 = vld [vmem:[%s1079_s30 + $0x8] sm:$0xff]  ;;  %v226_v53 = vld [vmem:[%s1079_s30 + $0x10] sm:$0xff] }
  0x43   : > { %368 = vmatpush.msra.mxu1 %v1135_v25  ;;  %304 = vmatpush.msra.mxu0 %v261_v23  ;;  %v244_v48 = vld [vmem:[#allocation5 + $0x20] sm:$0xff]  ;;  %v1197_v54 = vld [vmem:[%s1079_s30 + $0x78] sm:$0xff]  ;;  %v229_v57 = vld [vmem:[%s1079_s30 + $0x28] sm:$0xff] }
  0x44   : > { %675 = vmatpush.msra.mxu3 %v258_v26  ;;  %435 = vmatpush.msra.mxu2 %v1138_v27  ;;  %v227_v55 = vld [vmem:[%s1079_s30 + $0x18] sm:$0xff]  ;;  %v228_v56 = vld [vmem:[%s1079_s30 + $0x20] sm:$0xff]  ;;  %v230_v58 = vld [vmem:[%s1079_s30 + $0x30] sm:$0xff] }
  0x45   : > { %369 = vmatpush.msra.mxu1 %v1141_v28  ;;  %305 = vmatpush.msra.mxu0 %v258_v26  ;;  %v231_v59 = vld [vmem:[%s1079_s30 + $0x38] sm:$0xff]  ;;  %v232_v60 = vld [vmem:[%s1079_s30 + $0x40] sm:$0xff]  ;;  %v233_v61 = vld [vmem:[%s1079_s30 + $0x48] sm:$0xff] }
  0x46   : > { %676 = vmatpush.msra.mxu3 %v255_v29  ;;  %436 = vmatpush.msra.mxu2 %v1144_v30  ;;  %v234_v62 = vld [vmem:[%s1079_s30 + $0x50] sm:$0xff]  ;;  %v235_v63 = vld [vmem:[%s1079_s30 + $0x58] sm:$0xff]  ;;  %v288_v0 = vld [vmem:[#allocation7] sm:$0x7] }
  0x47   : > { %370 = vmatpush.msra.mxu1 %v1147_v31  ;;  %306 = vmatpush.msra.mxu0 %v255_v29  ;;  %v1236_v2 = vperm.slane %v288_v0, 1 }
  0x48   : > { %677 = vmatpush.msra.mxu3 %v252_v32  ;;  %437 = vmatpush.msra.mxu2 %v1150_v33 }
  0x49   : > { %371 = vmatpush.msra.mxu1 %v1153_v34  ;;  %307 = vmatpush.msra.mxu0 %v252_v32 }
  0x4a   : > { %678 = vmatpush.msra.mxu3 %v249_v35  ;;  %438 = vmatpush.msra.mxu2 %v1156_v36 }
  0x4b   : > { %372 = vmatpush.msra.mxu1 %v253_v37  ;;  %308 = vmatpush.msra.mxu0 %v249_v35 }
  0x4c   : > { %679 = vmatpush.msra.mxu3 %v246_v38  ;;  %439 = vmatpush.msra.mxu2 %v1160_v39 }
  0x4d   : > { %373 = vmatpush.msra.mxu1 %v250_v40  ;;  %309 = vmatpush.msra.mxu0 %v246_v38 }
  0x4e   : > { %680 = vmatpush.msra.mxu3 %v243_v41  ;;  %440 = vmatpush.msra.mxu2 %v1163_v42 }
  0x4f   : > { %374 = vmatpush.msra.mxu1 %v247_v43  ;;  %310 = vmatpush.msra.mxu0 %v243_v41 }
  0x50   : > { %681 = vmatpush.msra.mxu3 %v240_v44  ;;  %441 = vmatpush.msra.mxu2 %v1166_v45 }
  0x51   : > { %348 = vmatmul.f32.vlgmr.msra.gmra.mxu3 %v1170_v46  ;;  %442 = vmatmul.f32.vlgmr.msra.gmra.mxu2 %v224_v47 }
  0x52   : > { %682 = vmatpush.msrb.mxu3 %v1096_v6  ;;  %375 = vmatpush.msra.mxu1 %v244_v48 }
  0x53   : > { %311 = vmatpush.msra.mxu0 %v240_v44 }
  0x54   : > { %683 = vmatpush.msrb.mxu3 %v1099_v7  ;;  %376 = vmatpush.msra.mxu1 %v241_v49 }
  0x55   : > { %312 = vmatmul.f32.vlgmr.msra.gmra.mxu0 %v224_v47  ;;  %377 = vmatmul.f32.vlgmr.msra.gmra.mxu1 %v224_v47 }
  0x56   : > { %684 = vmatpush.msrb.mxu3 %v1105_v10 }
  0x58   : > { %685 = vmatpush.msrb.mxu3 %v1111_v13 }
  0x59   : > { %351 = vmatmul.f32.gmra.mxu3 %v1179_v50  ;;  %445 = vmatmul.f32.gmra.mxu2 %v225_v51 }
  0x5a   : > { %686 = vmatpush.msrb.mxu3 %v1117_v16 }
  0x5c   : > { %687 = vmatpush.msrb.mxu3 %v1123_v19 }
  0x5d   : > { %315 = vmatmul.f32.gmra.mxu0 %v225_v51  ;;  %380 = vmatmul.f32.gmra.mxu1 %v225_v51 }
  0x5e   : > { %688 = vmatpush.msrb.mxu3 %v1129_v22 }
  0x60   : > { %689 = vmatpush.msrb.mxu3 %v1135_v25 }
  0x61   : > { %354 = vmatmul.f32.gmra.mxu3 %v1188_v52  ;;  %448 = vmatmul.f32.gmra.mxu2 %v226_v53 }
  0x62   : > { %690 = vmatpush.msrb.mxu3 %v1141_v28 }
  0x64   : > { %691 = vmatpush.msrb.mxu3 %v1147_v31 }
  0x65   : > { %318 = vmatmul.f32.gmra.mxu0 %v226_v53  ;;  %383 = vmatmul.f32.gmra.mxu1 %v226_v53 }
  0x66   : > { %692 = vmatpush.msrb.mxu3 %v1153_v34 }
  0x68   : > { %693 = vmatpush.msrb.mxu3 %v253_v37 }
  0x69   : > { %357 = vmatmul.f32.gmra.mxu3 %v1197_v54  ;;  %451 = vmatmul.f32.gmra.mxu2 %v227_v55 }
  0x6a   : > { %694 = vmatpush.msrb.mxu3 %v250_v40 }
  0x6c   : > { %695 = vmatpush.msrb.mxu3 %v247_v43 }
  0x6d   : > { %321 = vmatmul.f32.gmra.mxu0 %v227_v55  ;;  %386 = vmatmul.f32.gmra.mxu1 %v227_v55 }
  0x6e   : > { %696 = vmatpush.msrb.mxu3 %v244_v48 }
  0x70   : > { %697 = vmatpush.msrb.mxu3 %v241_v49 }
  0x71   : > { %413 = vmatmul.f32.vlgmr.msrb.gmra.mxu3 %v1170_v46  ;;  %454 = vmatmul.f32.gmra.mxu2 %v228_v56 }
  0x72   : > { %698 = vmatpush.msra.mxu3 %v1089_v1  ;;  %v1234_v1 = vperm.slane %v288_v0, 0 }
  0x74   : > { %699 = vmatpush.msra.mxu3 %v1092_v3  ;;  %v1238_v3 = vperm.slane %v288_v0, 2 }
  0x75   : > { %324 = vmatmul.f32.gmra.mxu0 %v228_v56  ;;  %389 = vmatmul.f32.gmra.mxu1 %v228_v56 }
  0x76   : > { %700 = vmatpush.msra.mxu3 %v1094_v5 }
  0x78   : > { %701 = vmatpush.msra.mxu3 %v1102_v9 }
  0x79   : > { %416 = vmatmul.f32.gmra.mxu3 %v1179_v50  ;;  %457 = vmatmul.f32.gmra.mxu2 %v229_v57 }
  0x7a   : > { %702 = vmatpush.msra.mxu3 %v1108_v12 }
  0x7c   : > { %703 = vmatpush.msra.mxu3 %v1114_v15 }
  0x7d   : > { %327 = vmatmul.f32.gmra.mxu0 %v229_v57  ;;  %392 = vmatmul.f32.gmra.mxu1 %v229_v57 }
  0x7e   : > { %704 = vmatpush.msra.mxu3 %v1120_v18 }
  0x80   : > { %705 = vmatpush.msra.mxu3 %v1126_v21 }
  0x81   : > { %419 = vmatmul.f32.gmra.mxu3 %v1188_v52  ;;  %460 = vmatmul.f32.gmra.mxu2 %v230_v58 }
  0x82   : > { %706 = vmatpush.msra.mxu3 %v1132_v24 }
  0x84   : > { %707 = vmatpush.msra.mxu3 %v1138_v27 }
  0x85   : > { %330 = vmatmul.f32.gmra.mxu0 %v230_v58  ;;  %395 = vmatmul.f32.gmra.mxu1 %v230_v58 }
  0x86   : > { %708 = vmatpush.msra.mxu3 %v1144_v30 }
  0x88   : > { %709 = vmatpush.msra.mxu3 %v1150_v33 }
  0x89   : > { %422 = vmatmul.f32.gmra.mxu3 %v1197_v54  ;;  %463 = vmatmul.f32.gmra.mxu2 %v231_v59 }
  0x8a   : > { %710 = vmatpush.msra.mxu3 %v1156_v36 }
  0x8c   : > { %711 = vmatpush.msra.mxu3 %v1160_v39 }
  0x8d   : > { %333 = vmatmul.f32.gmra.mxu0 %v231_v59  ;;  %398 = vmatmul.f32.gmra.mxu1 %v231_v59 }
  0x8e   : > { %712 = vmatpush.msra.mxu3 %v1163_v42 }
  0x90   : > { %713 = vmatpush.msra.mxu3 %v1166_v45 }
  0x91   : > { %466 = vmatmul.f32.gmra.mxu2 %v232_v60  ;;  %478 = vmatmul.f32.vlgmr.msra.gmra.mxu3 %v1170_v46 }
  0x95   : > { %336 = vmatmul.f32.gmra.mxu0 %v232_v60  ;;  %401 = vmatmul.f32.gmra.mxu1 %v232_v60 }
  0x99   : > { %469 = vmatmul.f32.gmra.mxu2 %v233_v61  ;;  %481 = vmatmul.f32.gmra.mxu3 %v1179_v50 }
  0x9d   : > { %339 = vmatmul.f32.gmra.mxu0 %v233_v61  ;;  %404 = vmatmul.f32.gmra.mxu1 %v233_v61 }
  0xa1   : > { %472 = vmatmul.f32.gmra.mxu2 %v234_v62  ;;  %484 = vmatmul.f32.gmra.mxu3 %v1188_v52 }
  0xa5   : > { %342 = vmatmul.f32.gmra.mxu0 %v234_v62  ;;  %407 = vmatmul.f32.gmra.mxu1 %v234_v62 }
  0xa9   : > { %475 = vmatmul.f32.gmra.mxu2 %v235_v63  ;;  %487 = vmatmul.f32.gmra.mxu3 %v1197_v54 }
  0xad   : > { %345 = vmatmul.f32.gmra.mxu0 %v235_v63  ;;  %410 = vmatmul.f32.gmra.mxu1 %v235_v63 }
  0xd2   : > { %v313_v4 = vpop.f32.mrf.mxu0  ;;  %v378_v5 = vpop.f32.mrf.mxu1 }
  0xd3   : > { %v314_v6 = vadd.f32 %v313_v4, %v1234_v1  ;;  %v379_v7 = vadd.f32 %v378_v5, %v1236_v2 }
  0xd4   : > { %v349_v8 = vpop.f32.mrf.mxu3  ;;  %v443_v9 = vpop.f32.mrf.mxu2 }
  0xd5   : > { %491 = vst [vmem:[%s1242_s23] sm:$0xff] %v314_v6  ;;  %v350_v10 = vadd.f32 %v349_v8, %v1234_v1  ;;  %v444_v11 = vadd.f32 %v443_v9, %v1238_v3 }
  0xd6   : > { %492 = vst [vmem:[%s1242_s23 + $0x8] sm:$0xff] %v379_v7 }
  0xd7   : > { %527 = vst [vmem:[%s1242_s23 + $0x120] sm:$0xff] %v350_v10 }
  0xd8   : > { %493 = vst [vmem:[%s1242_s23 + $0x10] sm:$0xff] %v444_v11 }
  0xda   : > { %v316_v12 = vpop.f32.mrf.mxu0  ;;  %v381_v13 = vpop.f32.mrf.mxu1 }
  0xdb   : > { %v317_v14 = vadd.f32 %v316_v12, %v1234_v1  ;;  %v382_v15 = vadd.f32 %v381_v13, %v1236_v2 }
  0xdc   : > { %v352_v16 = vpop.f32.mrf.mxu3  ;;  %v446_v17 = vpop.f32.mrf.mxu2 }
  0xdd   : > { %494 = vst [vmem:[%s1242_s23 + $0x18] sm:$0xff] %v317_v14  ;;  %v353_v18 = vadd.f32 %v352_v16, %v1234_v1  ;;  %v447_v19 = vadd.f32 %v446_v17, %v1238_v3 }
  0xde   : > { %495 = vst [vmem:[%s1242_s23 + $0x20] sm:$0xff] %v382_v15 }
  0xdf   : > { %530 = vst [vmem:[%s1242_s23 + $0x138] sm:$0xff] %v353_v18 }
  0xe0   : > { %496 = vst [vmem:[%s1242_s23 + $0x28] sm:$0xff] %v447_v19 }
  0xe2   : > { %v319_v20 = vpop.f32.mrf.mxu0  ;;  %v384_v21 = vpop.f32.mrf.mxu1 }
  0xe3   : > { %v320_v22 = vadd.f32 %v319_v20, %v1234_v1  ;;  %v385_v23 = vadd.f32 %v384_v21, %v1236_v2 }
  0xe4   : > { %v355_v24 = vpop.f32.mrf.mxu3  ;;  %v449_v25 = vpop.f32.mrf.mxu2 }
  0xe5   : > { %497 = vst [vmem:[%s1242_s23 + $0x30] sm:$0xff] %v320_v22  ;;  %v356_v26 = vadd.f32 %v355_v24, %v1234_v1  ;;  %v450_v27 = vadd.f32 %v449_v25, %v1238_v3 }
  0xe6   : > { %498 = vst [vmem:[%s1242_s23 + $0x38] sm:$0xff] %v385_v23 }
  0xe7   : > { %533 = vst [vmem:[%s1242_s23 + $0x150] sm:$0xff] %v356_v26 }
  0xe8   : > { %499 = vst [vmem:[%s1242_s23 + $0x40] sm:$0xff] %v450_v27 }
  0xea   : > { %v322_v28 = vpop.f32.mrf.mxu0  ;;  %v387_v29 = vpop.f32.mrf.mxu1 }
  0xeb   : > { %v323_v30 = vadd.f32 %v322_v28, %v1234_v1  ;;  %v388_v31 = vadd.f32 %v387_v29, %v1236_v2 }
  0xec   : > { %v358_v32 = vpop.f32.mrf.mxu3  ;;  %v452_v33 = vpop.f32.mrf.mxu2 }
  0xed   : > { %500 = vst [vmem:[%s1242_s23 + $0x48] sm:$0xff] %v323_v30  ;;  %v359_v34 = vadd.f32 %v358_v32, %v1234_v1  ;;  %v453_v35 = vadd.f32 %v452_v33, %v1238_v3 }
  0xee   : > { %501 = vst [vmem:[%s1242_s23 + $0x50] sm:$0xff] %v388_v31 }
  0xef   : > { %536 = vst [vmem:[%s1242_s23 + $0x168] sm:$0xff] %v359_v34 }
  0xf0   : > { %502 = vst [vmem:[%s1242_s23 + $0x58] sm:$0xff] %v453_v35 }
  0xf2   : > { %v325_v36 = vpop.f32.mrf.mxu0  ;;  %v390_v37 = vpop.f32.mrf.mxu1 }
  0xf3   : > { %v326_v38 = vadd.f32 %v325_v36, %v1234_v1  ;;  %v391_v39 = vadd.f32 %v390_v37, %v1236_v2 }
  0xf4   : > { %v414_v40 = vpop.f32.mrf.mxu3  ;;  %v455_v41 = vpop.f32.mrf.mxu2 }
  0xf5   : > { %503 = vst [vmem:[%s1242_s23 + $0x60] sm:$0xff] %v326_v38  ;;  %v415_v42 = vadd.f32 %v414_v40, %v1236_v2  ;;  %v456_v43 = vadd.f32 %v455_v41, %v1238_v3 }
  0xf6   : > { %504 = vst [vmem:[%s1242_s23 + $0x68] sm:$0xff] %v391_v39 }
  0xf7   : > { %528 = vst [vmem:[%s1242_s23 + $0x128] sm:$0xff] %v415_v42 }
  0xf8   : > { %505 = vst [vmem:[%s1242_s23 + $0x70] sm:$0xff] %v456_v43 }
  0xfa   : > { %v328_v44 = vpop.f32.mrf.mxu0  ;;  %v393_v45 = vpop.f32.mrf.mxu1 }
  0xfb   : > { %v329_v46 = vadd.f32 %v328_v44, %v1234_v1  ;;  %v394_v47 = vadd.f32 %v393_v45, %v1236_v2 }
  0xfc   : > { %v417_v48 = vpop.f32.mrf.mxu3  ;;  %v458_v49 = vpop.f32.mrf.mxu2 }
  0xfd   : > { %506 = vst [vmem:[%s1242_s23 + $0x78] sm:$0xff] %v329_v46  ;;  %v418_v50 = vadd.f32 %v417_v48, %v1236_v2  ;;  %v459_v51 = vadd.f32 %v458_v49, %v1238_v3 }
  0xfe   : > { %507 = vst [vmem:[%s1242_s23 + $0x80] sm:$0xff] %v394_v47 }
  0xff   : > { %531 = vst [vmem:[%s1242_s23 + $0x140] sm:$0xff] %v418_v50 }
 0x100   : > { %508 = vst [vmem:[%s1242_s23 + $0x88] sm:$0xff] %v459_v51 }
 0x102   : > { %v331_v52 = vpop.f32.mrf.mxu0  ;;  %v396_v53 = vpop.f32.mrf.mxu1 }
 0x103   : > { %v332_v54 = vadd.f32 %v331_v52, %v1234_v1  ;;  %v397_v55 = vadd.f32 %v396_v53, %v1236_v2 }
 0x104   : > { %v420_v56 = vpop.f32.mrf.mxu3  ;;  %v461_v57 = vpop.f32.mrf.mxu2 }
 0x105   : > { %509 = vst [vmem:[%s1242_s23 + $0x90] sm:$0xff] %v332_v54  ;;  %v421_v58 = vadd.f32 %v420_v56, %v1236_v2  ;;  %v462_v59 = vadd.f32 %v461_v57, %v1238_v3 }
 0x106   : > { %510 = vst [vmem:[%s1242_s23 + $0x98] sm:$0xff] %v397_v55 }
 0x107   : > { %534 = vst [vmem:[%s1242_s23 + $0x158] sm:$0xff] %v421_v58 }
 0x108   : > { %511 = vst [vmem:[%s1242_s23 + $0xa0] sm:$0xff] %v462_v59 }
 0x10a   : > { %v334_v60 = vpop.f32.mrf.mxu0  ;;  %v399_v61 = vpop.f32.mrf.mxu1 }
 0x10b   : > { %v335_v62 = vadd.f32 %v334_v60, %v1234_v1  ;;  %v400_v63 = vadd.f32 %v399_v61, %v1236_v2 }
 0x10c   : > { %v423_v0 = vpop.f32.mrf.mxu3  ;;  %v464_v4 = vpop.f32.mrf.mxu2 }
 0x10d   : > { %512 = vst [vmem:[%s1242_s23 + $0xa8] sm:$0xff] %v335_v62  ;;  %v424_v5 = vadd.f32 %v423_v0, %v1236_v2  ;;  %v465_v6 = vadd.f32 %v464_v4, %v1238_v3 }
 0x10e   : > { %513 = vst [vmem:[%s1242_s23 + $0xb0] sm:$0xff] %v400_v63 }
 0x10f   : > { %537 = vst [vmem:[%s1242_s23 + $0x170] sm:$0xff] %v424_v5 }
 0x110   : > { %514 = vst [vmem:[%s1242_s23 + $0xb8] sm:$0xff] %v465_v6 }
 0x112   : > { %v337_v7 = vpop.f32.mrf.mxu0  ;;  %v402_v8 = vpop.f32.mrf.mxu1 }
 0x113   : > { %v338_v9 = vadd.f32 %v337_v7, %v1234_v1  ;;  %v403_v10 = vadd.f32 %v402_v8, %v1236_v2 }
 0x114   : > { %v467_v11 = vpop.f32.mrf.mxu2  ;;  %v479_v12 = vpop.f32.mrf.mxu3 }
 0x115   : > { %515 = vst [vmem:[%s1242_s23 + $0xc0] sm:$0xff] %v338_v9  ;;  %v468_v13 = vadd.f32 %v467_v11, %v1238_v3  ;;  %v480_v14 = vadd.f32 %v479_v12, %v1238_v3 }
 0x116   : > { %516 = vst [vmem:[%s1242_s23 + $0xc8] sm:$0xff] %v403_v10 }
 0x117   : > { %517 = vst [vmem:[%s1242_s23 + $0xd0] sm:$0xff] %v468_v13 }
 0x118   : > { %529 = vst [vmem:[%s1242_s23 + $0x130] sm:$0xff] %v480_v14 }
 0x11a   : > { %v340_v15 = vpop.f32.mrf.mxu0  ;;  %v405_v16 = vpop.f32.mrf.mxu1 }
 0x11b   : > { %v341_v17 = vadd.f32 %v340_v15, %v1234_v1  ;;  %v406_v18 = vadd.f32 %v405_v16, %v1236_v2 }
 0x11c   : > { %v470_v19 = vpop.f32.mrf.mxu2  ;;  %v482_v20 = vpop.f32.mrf.mxu3 }
 0x11d   : > { %518 = vst [vmem:[%s1242_s23 + $0xd8] sm:$0xff] %v341_v17  ;;  %v471_v21 = vadd.f32 %v470_v19, %v1238_v3  ;;  %v483_v22 = vadd.f32 %v482_v20, %v1238_v3 }
 0x11e   : > { %519 = vst [vmem:[%s1242_s23 + $0xe0] sm:$0xff] %v406_v18 }
 0x11f   : > { %520 = vst [vmem:[%s1242_s23 + $0xe8] sm:$0xff] %v471_v21 }
 0x120   : > { %532 = vst [vmem:[%s1242_s23 + $0x148] sm:$0xff] %v483_v22 }
 0x122   : > { %v343_v23 = vpop.f32.mrf.mxu0  ;;  %v408_v24 = vpop.f32.mrf.mxu1 }
 0x123   : > { %v344_v25 = vadd.f32 %v343_v23, %v1234_v1  ;;  %v409_v26 = vadd.f32 %v408_v24, %v1236_v2 }
 0x124   : > { %v473_v27 = vpop.f32.mrf.mxu2  ;;  %v485_v28 = vpop.f32.mrf.mxu3 }
 0x125   : > { %521 = vst [vmem:[%s1242_s23 + $0xf0] sm:$0xff] %v344_v25  ;;  %v474_v29 = vadd.f32 %v473_v27, %v1238_v3  ;;  %v486_v30 = vadd.f32 %v485_v28, %v1238_v3 }
 0x126   : > { %522 = vst [vmem:[%s1242_s23 + $0xf8] sm:$0xff] %v409_v26 }
 0x127   : > { %523 = vst [vmem:[%s1242_s23 + $0x100] sm:$0xff] %v474_v29 }
 0x128   : > { %535 = vst [vmem:[%s1242_s23 + $0x160] sm:$0xff] %v486_v30 }
 0x12a   : > { %v346_v31 = vpop.f32.mrf.mxu0  ;;  %v411_v32 = vpop.f32.mrf.mxu1 }
 0x12b   : > { %v347_v33 = vadd.f32 %v346_v31, %v1234_v1  ;;  %v412_v34 = vadd.f32 %v411_v32, %v1236_v2 }
 0x12c   : > { %v476_v35 = vpop.f32.mrf.mxu2  ;;  %v488_v36 = vpop.f32.mrf.mxu3 }
 0x12d   : > { %524 = vst [vmem:[%s1242_s23 + $0x108] sm:$0xff] %v347_v33  ;;  %v477_v37 = vadd.f32 %v476_v35, %v1238_v3  ;;  %v489_v38 = vadd.f32 %v488_v36, %v1238_v3 }
 0x12e   : > { %525 = vst [vmem:[%s1242_s23 + $0x110] sm:$0xff] %v412_v34 }
 0x12f   : > { %526 = vst [vmem:[%s1242_s23 + $0x118] sm:$0xff] %v477_v37 }
 0x130   : > { %538 = vst [vmem:[%s1242_s23 + $0x178] sm:$0xff] %v489_v38 }
 0x131   : > { %906 = shalt.err (!%p903_p10)
}
 0x132   : > { %s957_s22 = smov 384   ;;  %s958_s25 = smov 24  }
 0x133   : > { %726 = dma.vmem_to_hbm [thread:$0]  (%p1045_p3), %s554_s16, 6144, %s556_s4, %s540_s5, %s957_s22, %s957_s22, %s958_s25  }
 0x134 PF: > { %s570_s30 = sand.u32 1, %s937_s12   ;;  %p1381_p12 = scmp.ge.s32.totalorder %s949_s15, 2 }
 0x135   : > { %s571_s18 = scalar_lea.sflag [#allocation4], %s570_s30 }
 0x136   : > { %p740_p13 = pnand %p1381_p12, %p1014_p6 }
 0x138   : > { %p741_p0 = pneg %p740_p13 }
 0x13a   : > { %932 = dma.done.wait (%p741_p0), %s571_s18, 6144  }
 0x13b   : > { %934 = vsyncadd (%p741_p0), %s571_s18, 4294961152  ;;  %p17_p5 = scmp.ge.s32.totalorder %s1035_s6, 4   ;;  %s1382_s12 = smov %s941_s13 }
 0x13c   : > { %s1383_s13 = smov %s945_s14  ;;  %s1384_s14 = smov %s1051_s10 }
 0x13d   : > { %s1385_s15 = smov %s1035_s6  ;;  %19 = sbr.rel (!%p17_p5) target bundleno = 6 (0x6), region = 85 }
 0x142   :  { %577 = vsyncpa [#allocation3], 1 }
 0x143   :  { %579 = vsyncpa [#allocation3 + $0x1], 1 }
 0x144   :  { %580 = vsyncpa [#allocation6], 1 }
 0x145   :  { %581 = vsyncpa [#allocation4], 1 }
 0x146   :  { %583 = vsyncpa [#allocation4 + $0x1], 1 }

</bundles_post_ra>
